<compile_context>
chip_gen: v6e
topology: v6e:2x2x1
jax: 0.10.0
libtpu: 0.0.40
codegen_flags: <defaults>
</compile_context>

<pallas_src>
import functools
import math

import jax
import jax.numpy as jnp
from jax.experimental import pallas as pl
from jax.experimental.pallas import tpu as pltpu


def _layer_norm(x, gamma, beta, eps=1e-6):
    mu = jnp.mean(x, axis=-1, keepdims=True)
    var = jnp.mean((x - mu) ** 2, axis=-1, keepdims=True)
    return (x - mu) * jax.lax.rsqrt(var + eps) * gamma + beta


def _gelu(x):
    return jax.nn.gelu(x, approximate=True)


def sasrec_block_kernel(n_heads, d_k, d_v,
                        x_ref, lm_ref,
                        wqkv_ref, bqkv_ref, wfc_ref, bfc_ref,
                        ln1_g_ref, ln1_b_ref,
                        w1_ref, b1_ref, w2_ref, b2_ref,
                        ln2_g_ref, ln2_b_ref,
                        a1wd_ref, a1bd_ref, a1wu_ref, a1bu_ref,
                        a2wd_ref, a2bd_ref, a2wu_ref, a2bu_ref,
                        out_ref):
    bb, L, D = x_ref.shape
    H, dk, dv = n_heads, d_k, d_v
    cdt = wqkv_ref.dtype  # compute dtype for MXU operands (f32 or bf16)

    x = x_ref[...]                       # (bb, L, D)
    xf = x.reshape(bb * L, D)            # fold batch into the matmul M dimension

    def dot(a, w):
        return jnp.dot(a.astype(w.dtype), w, preferred_element_type=jnp.float32)

    # ----- fused Q/K/V projection (Q pre-scaled by 1/sqrt(d_k) wrapper-side) -----
    qkv = dot(xf, wqkv_ref[...]) + bqkv_ref[...]        # (bb*L, 2*H*dk + H*dv)
    q = qkv[:, :H * dk]
    k = qkv[:, H * dk:2 * H * dk]
    v = qkv[:, 2 * H * dk:]

    # ----- causal + key-padding mask, synthesized in-kernel -----
    row = jax.lax.broadcasted_iota(jnp.int32, (L, L), 0)
    col = jax.lax.broadcasted_iota(jnp.int32, (L, L), 1)
    causal = row >= col                                  # (L, L)
    key_valid = lm_ref[...] != 0.0                       # (bb, 1, L)
    attend = jnp.logical_and(causal[None, :, :], key_valid)   # (bb, L, L)

    # ----- multi-head self attention, batched over the whole batch block -----
    ctx_heads = []
    for h in range(H):                                   # static tiny loop over heads
        qh = q[:, h * dk:(h + 1) * dk].reshape(bb, L, dk).astype(cdt)
        kh = k[:, h * dk:(h + 1) * dk].reshape(bb, L, dk).astype(cdt)
        vh = v[:, h * dv:(h + 1) * dv].reshape(bb, L, dv).astype(cdt)
        s = jnp.einsum('bld,bmd->blm', qh, kh,
                       preferred_element_type=jnp.float32)          # (bb, L, L)
        s = jnp.where(attend, s, -1e9)
        s = s - jnp.max(s, axis=-1, keepdims=True)
        p = jnp.exp(s)
        p = p * pl.reciprocal(jnp.sum(p, axis=-1, keepdims=True), approx=True)
        ctx_heads.append(jnp.einsum('blm,bmd->bld', p.astype(cdt), vh,
                                    preferred_element_type=jnp.float32))
    ctx = jnp.concatenate(ctx_heads, axis=-1).reshape(bb * L, H * dv)

    h1 = dot(ctx, wfc_ref[...]) + bfc_ref[...]           # (bb*L, D)

    # ----- adapter 1 (residual inside adapter) -----
    a = _gelu(dot(h1, a1wd_ref[...]) + a1bd_ref[...])
    h1 = h1 + dot(a, a1wu_ref[...]) + a1bu_ref[...]

    # ----- attention layer norm (residual = block input) -----
    h1 = _layer_norm(xf + h1, ln1_g_ref[...], ln1_b_ref[...])

    # ----- position-wise feed forward -----
    f = _gelu(dot(h1, w1_ref[...]) + b1_ref[...])
    f = dot(f, w2_ref[...]) + b2_ref[...]

    # ----- adapter 2 -----
    a = _gelu(dot(f, a2wd_ref[...]) + a2bd_ref[...])
    f = f + dot(a, a2wu_ref[...]) + a2bu_ref[...]

    # ----- FFN layer norm -----
    out = _layer_norm(h1 + f, ln2_g_ref[...], ln2_b_ref[...])
    out_ref[...] = out.reshape(bb, L, D).astype(out_ref.dtype)


def sasrec_adapted_self_output(x, log_mask, params, *, n_heads, d_k, d_v,
                               batch_block=None, compute_dtype=None):
    """Fused SASRec transformer block (+ adapters) over a batch of sequences.

    batch_block: sequences processed per grid step.  Default = B (single grid step,
      best on v5e/v6e single-TC).  On v7x set batch_block = B // 2 so both TensorCores
      get a "parallel" block.
    compute_dtype: optional jnp.bfloat16 to run the MXU dots in bf16 (f32 accumulate).
    """
    B, L, D = x.shape
    if batch_block is None:
        batch_block = B
    assert B % batch_block == 0
    n_blocks = B // batch_block

    # Fuse Q/K/V weights and fold the attention scale into Q (done once, wrapper-side).
    scale = 1.0 / math.sqrt(d_k)
    wqkv = jnp.concatenate([params['wq'] * scale, params['wk'], params['wv']], axis=1)
    bqkv = jnp.concatenate([params['bq'] * scale, params['bk'], params['bv']], axis=1)

    def maybe_cast(w):
        return w.astype(compute_dtype) if compute_dtype is not None else w

    weights = [
        maybe_cast(wqkv), bqkv,
        maybe_cast(params['wfc']), params['bfc'],
        params['ln1_g'], params['ln1_b'],
        maybe_cast(params['w1']), params['b1'],
        maybe_cast(params['w2']), params['b2'],
        params['ln2_g'], params['ln2_b'],
        maybe_cast(params['a1_wd']), params['a1_bd'],
        maybe_cast(params['a1_wu']), params['a1_bu'],
        maybe_cast(params['a2_wd']), params['a2_bd'],
        maybe_cast(params['a2_wu']), params['a2_bu'],
    ]

    lm = log_mask.reshape(B, 1, L).astype(jnp.float32)

    def full_spec(a):
        nd = a.ndim
        return pl.BlockSpec(a.shape, lambda i, _nd=nd: (0,) * _nd)

    in_specs = [
        pl.BlockSpec((batch_block, L, D), lambda i: (i, 0, 0)),
        pl.BlockSpec((batch_block, 1, L), lambda i: (i, 0, 0)),
    ] + [full_spec(w) for w in weights]
    out_spec = pl.BlockSpec((batch_block, L, D), lambda i: (i, 0, 0))

    kernel = functools.partial(sasrec_block_kernel, n_heads, d_k, d_v)
    return pl.pallas_call(
        kernel,
        out_shape=jax.ShapeDtypeStruct((B, L, D), x.dtype),
        grid_spec=pltpu.PrefetchScalarGridSpec(
            num_scalar_prefetch=0,
            grid=(n_blocks,),
            in_specs=in_specs,
            out_specs=out_spec,
        ),
        compiler_params=pltpu.CompilerParams(dimension_semantics=("parallel",)),
        # NOTE: at production sizes (D, d_inner large) on v7x (64 MiB VMEM), set
        # pltpu.CompilerParams(vmem_limit_bytes=...) and K-tile w1/w2 BlockSpecs.
    )(x, lm, *weights)


# ------------------------- pure-JAX reference (for checking) -------------------------
def reference(x, log_mask, p, *, n_heads, d_k, d_v):
    B, L, D = x.shape
    hp = jax.lax.Precision.HIGHEST

    def lin(t, w, b):
        return jnp.einsum('bld,do->blo', t, w, precision=hp) + b

    q = lin(x, p['wq'], p['bq']).reshape(B, L, n_heads, d_k).transpose(0, 2, 1, 3)
    k = lin(x, p['wk'], p['bk']).reshape(B, L, n_heads, d_k).transpose(0, 2, 1, 3)
    v = lin(x, p['wv'], p['bv']).reshape(B, L, n_heads, d_v).transpose(0, 2, 1, 3)
    scores = jnp.einsum('bhqd,bhkd->bhqk', q, k, precision=hp) / math.sqrt(d_k)
    causal = jnp.tril(jnp.ones((L, L), bool))
    attend = causal[None, None, :, :] & (log_mask[:, None, None, :] != 0)
    scores = jnp.where(attend, scores, -1e9)
    attn = jax.nn.softmax(scores, axis=-1)
    ctx = jnp.einsum('bhqk,bhkd->bhqd', attn, v, precision=hp)
    ctx = ctx.transpose(0, 2, 1, 3).reshape(B, L, n_heads * d_v)
    h1 = lin(ctx, p['wfc'], p['bfc'])
    a = _gelu(lin(h1, p['a1_wd'], p['a1_bd']))
    h1 = h1 + lin(a, p['a1_wu'], p['a1_bu'])
    h1 = _layer_norm(x + h1, p['ln1_g'], p['ln1_b'])
    f = _gelu(lin(h1, p['w1'], p['b1']))
    f = lin(f, p['w2'], p['b2'])
    a = _gelu(lin(f, p['a2_wd'], p['a2_bd']))
    f = f + lin(a, p['a2_wu'], p['a2_bu'])
    return _layer_norm(h1 + f, p['ln2_g'], p['ln2_b'])


# ------------------------- deterministic parameter construction ----------------------
def make_params(key, D, n_heads, d_k, d_v, d_inner, down):
    def xavier(k, shape):
        fan_in, fan_out = shape
        return math.sqrt(2.0 / (fan_in + fan_out)) * jax.random.normal(k, shape, jnp.float32)

    ks = iter(jax.random.split(key, 32))
    p = {}
    p['wq'] = xavier(next(ks), (D, n_heads * d_k)); p['bq'] = 0.01 * jax.random.normal(next(ks), (1, n_heads * d_k), jnp.float32)
    p['wk'] = xavier(next(ks), (D, n_heads * d_k)); p['bk'] = 0.01 * jax.random.normal(next(ks), (1, n_heads * d_k), jnp.float32)
    p['wv'] = xavier(next(ks), (D, n_heads * d_v)); p['bv'] = 0.01 * jax.random.normal(next(ks), (1, n_heads * d_v), jnp.float32)
    p['wfc'] = xavier(next(ks), (n_heads * d_v, D)); p['bfc'] = 0.01 * jax.random.normal(next(ks), (1, D), jnp.float32)
    p['ln1_g'] = 1.0 + 0.1 * jax.random.normal(next(ks), (1, D), jnp.float32)
    p['ln1_b'] = 0.1 * jax.random.normal(next(ks), (1, D), jnp.float32)
    p['w1'] = xavier(next(ks), (D, d_inner)); p['b1'] = 0.01 * jax.random.normal(next(ks), (1, d_inner), jnp.float32)
    p['w2'] = xavier(next(ks), (d_inner, D)); p['b2'] = 0.01 * jax.random.normal(next(ks), (1, D), jnp.float32)
    p['ln2_g'] = 1.0 + 0.1 * jax.random.normal(next(ks), (1, D), jnp.float32)
    p['ln2_b'] = 0.1 * jax.random.normal(next(ks), (1, D), jnp.float32)
    for name in ('a1', 'a2'):
        p[f'{name}_wd'] = xavier(next(ks), (D, down)); p[f'{name}_bd'] = 0.01 * jax.random.normal(next(ks), (1, down), jnp.float32)
        p[f'{name}_wu'] = xavier(next(ks), (down, D)); p[f'{name}_bu'] = 0.01 * jax.random.normal(next(ks), (1, D), jnp.float32)
    return p


if __name__ == "__main__":
    B, L, D = 2, 8, 32
    n_heads, d_k, d_v = 2, 16, 16
    d_inner, adapter_down = 64, 8

    key = jax.random.PRNGKey(0)
    k_x, k_p = jax.random.split(key)
    x = jax.random.normal(k_x, (B, L, D), jnp.float32)
    # SASRec-style log_mask: 1 = real interaction, 0 = (left) padding.
    log_mask = jnp.array([[0., 0., 1., 1., 1., 1., 1., 1.],
                          [1., 1., 1., 1., 1., 1., 1., 1.]], jnp.float32)
    params = make_params(k_p, D, n_heads, d_k, d_v, d_inner, adapter_down)

    out = sasrec_adapted_self_output(x, log_mask, params,
                                     n_heads=n_heads, d_k=d_k, d_v=d_v)
    out = jax.block_until_ready(out)

    ref = reference(x, log_mask, params, n_heads=n_heads, d_k=d_k, d_v=d_v)
    assert out.shape == (B, L, D)
    assert jnp.allclose(out, ref, rtol=1e-2, atol=1e-2), float(jnp.max(jnp.abs(out - ref)))

    print("KERNEL_OK")
</pallas_src>

<mosaic_0001>
module attributes {stable_mosaic.version = 11 : i64} {
  func.func @sasrec_block_kernel(%arg0: i32, %arg1: memref<2x8x32xf32, #tpu.memory_space<vmem>>, %arg2: memref<2x1x8xf32, #tpu.memory_space<vmem>>, %arg3: memref<32x96xf32, #tpu.memory_space<vmem>>, %arg4: memref<1x96xf32, #tpu.memory_space<vmem>>, %arg5: memref<32x32xf32, #tpu.memory_space<vmem>>, %arg6: memref<1x32xf32, #tpu.memory_space<vmem>>, %arg7: memref<1x32xf32, #tpu.memory_space<vmem>>, %arg8: memref<1x32xf32, #tpu.memory_space<vmem>>, %arg9: memref<32x64xf32, #tpu.memory_space<vmem>>, %arg10: memref<1x64xf32, #tpu.memory_space<vmem>>, %arg11: memref<64x32xf32, #tpu.memory_space<vmem>>, %arg12: memref<1x32xf32, #tpu.memory_space<vmem>>, %arg13: memref<1x32xf32, #tpu.memory_space<vmem>>, %arg14: memref<1x32xf32, #tpu.memory_space<vmem>>, %arg15: memref<32x8xf32, #tpu.memory_space<vmem>>, %arg16: memref<1x8xf32, #tpu.memory_space<vmem>>, %arg17: memref<8x32xf32, #tpu.memory_space<vmem>>, %arg18: memref<1x32xf32, #tpu.memory_space<vmem>>, %arg19: memref<32x8xf32, #tpu.memory_space<vmem>>, %arg20: memref<1x8xf32, #tpu.memory_space<vmem>>, %arg21: memref<8x32xf32, #tpu.memory_space<vmem>>, %arg22: memref<1x32xf32, #tpu.memory_space<vmem>>, %arg23: memref<2x8x32xf32, #tpu.memory_space<vmem>>) attributes {dimension_semantics = [#tpu.dimension_semantics<parallel>], iteration_bounds = array<i64: 1>, scalar_prefetch = 0 : i64, scratch_operands = 0 : i64, tpu.core_type = #tpu.core_type<tc>, window_params = [{transform_indices = @transform_0, window_bounds = array<i64: 2, 8, 32>}, {transform_indices = @transform_1, window_bounds = array<i64: 2, 1, 8>}, {pipeline_mode = #tpu.pipeline_mode<synchronous>, transform_indices = @transform_2, window_bounds = array<i64: 32, 96>}, {pipeline_mode = #tpu.pipeline_mode<synchronous>, transform_indices = @transform_3, window_bounds = array<i64: 1, 96>}, {pipeline_mode = #tpu.pipeline_mode<synchronous>, transform_indices = @transform_4, window_bounds = array<i64: 32, 32>}, {pipeline_mode = #tpu.pipeline_mode<synchronous>, transform_indices = @transform_5, window_bounds = array<i64: 1, 32>}, {pipeline_mode = #tpu.pipeline_mode<synchronous>, transform_indices = @transform_6, window_bounds = array<i64: 1, 32>}, {pipeline_mode = #tpu.pipeline_mode<synchronous>, transform_indices = @transform_7, window_bounds = array<i64: 1, 32>}, {pipeline_mode = #tpu.pipeline_mode<synchronous>, transform_indices = @transform_8, window_bounds = array<i64: 32, 64>}, {pipeline_mode = #tpu.pipeline_mode<synchronous>, transform_indices = @transform_9, window_bounds = array<i64: 1, 64>}, {pipeline_mode = #tpu.pipeline_mode<synchronous>, transform_indices = @transform_10, window_bounds = array<i64: 64, 32>}, {pipeline_mode = #tpu.pipeline_mode<synchronous>, transform_indices = @transform_11, window_bounds = array<i64: 1, 32>}, {pipeline_mode = #tpu.pipeline_mode<synchronous>, transform_indices = @transform_12, window_bounds = array<i64: 1, 32>}, {pipeline_mode = #tpu.pipeline_mode<synchronous>, transform_indices = @transform_13, window_bounds = array<i64: 1, 32>}, {pipeline_mode = #tpu.pipeline_mode<synchronous>, transform_indices = @transform_14, window_bounds = array<i64: 32, 8>}, {pipeline_mode = #tpu.pipeline_mode<synchronous>, transform_indices = @transform_15, window_bounds = array<i64: 1, 8>}, {pipeline_mode = #tpu.pipeline_mode<synchronous>, transform_indices = @transform_16, window_bounds = array<i64: 8, 32>}, {pipeline_mode = #tpu.pipeline_mode<synchronous>, transform_indices = @transform_17, window_bounds = array<i64: 1, 32>}, {pipeline_mode = #tpu.pipeline_mode<synchronous>, transform_indices = @transform_18, window_bounds = array<i64: 32, 8>}, {pipeline_mode = #tpu.pipeline_mode<synchronous>, transform_indices = @transform_19, window_bounds = array<i64: 1, 8>}, {pipeline_mode = #tpu.pipeline_mode<synchronous>, transform_indices = @transform_20, window_bounds = array<i64: 8, 32>}, {pipeline_mode = #tpu.pipeline_mode<synchronous>, transform_indices = @transform_21, window_bounds = array<i64: 1, 32>}, {transform_indices = @transform_22, window_bounds = array<i64: 2, 8, 32>}]} {
    %c0 = arith.constant 0 : index
    %c0_0 = arith.constant 0 : index
    %c0_1 = arith.constant 0 : index
    %0 = vector.load %arg1[%c0, %c0_0, %c0_1] : memref<2x8x32xf32, #tpu.memory_space<vmem>>, vector<2x8x32xf32>
    %1 = vector.shape_cast %0 : vector<2x8x32xf32> to vector<16x32xf32>
    %c0_2 = arith.constant 0 : index
    %c0_3 = arith.constant 0 : index
    %2 = vector.load %arg3[%c0_2, %c0_3] : memref<32x96xf32, #tpu.memory_space<vmem>>, vector<32x96xf32>
    %cst = arith.constant dense<0.000000e+00> : vector<16x96xf32>
    %3 = tpu.matmul %1, %2, %cst {dimension_numbers = #tpu.dot_dimension_numbers<[1], [0], [0], [1], [0, 0, 1, 1], [], []>} : vector<16x32xf32>, vector<32x96xf32>, vector<16x96xf32> -> vector<16x96xf32>
    %c0_4 = arith.constant 0 : index
    %c0_5 = arith.constant 0 : index
    %4 = vector.load %arg4[%c0_4, %c0_5] : memref<1x96xf32, #tpu.memory_space<vmem>>, vector<1x96xf32>
    %5 = vector.broadcast %4 : vector<1x96xf32> to vector<16x96xf32>
    %6 = arith.addf %3, %5 : vector<16x96xf32>
    %7 = vector.extract_strided_slice %6 {offsets = [0, 0], sizes = [16, 32], strides = [1, 1]} : vector<16x96xf32> to vector<16x32xf32>
    %8 = vector.extract_strided_slice %6 {offsets = [0, 32], sizes = [16, 32], strides = [1, 1]} : vector<16x96xf32> to vector<16x32xf32>
    %9 = vector.extract_strided_slice %6 {offsets = [0, 64], sizes = [16, 32], strides = [1, 1]} : vector<16x96xf32> to vector<16x32xf32>
    %10 = tpu.iota {dimensions = array<i32: 0>} : vector<8x8xi32>
    %11 = tpu.iota {dimensions = array<i32: 1>} : vector<8x8xi32>
    %12 = arith.cmpi sge, %10, %11 : vector<8x8xi32>
    %c0_6 = arith.constant 0 : index
    %c0_7 = arith.constant 0 : index
    %c0_8 = arith.constant 0 : index
    %13 = vector.load %arg2[%c0_6, %c0_7, %c0_8] : memref<2x1x8xf32, #tpu.memory_space<vmem>>, vector<2x1x8xf32>
    %cst_9 = arith.constant 0.000000e+00 : f32
    %14 = vector.broadcast %cst_9 : f32 to vector<2x1x8xf32>
    %15 = arith.cmpf one, %13, %14 : vector<2x1x8xf32>
    %16 = vector.shape_cast %12 : vector<8x8xi1> to vector<1x8x8xi1>
    %17 = vector.broadcast %16 : vector<1x8x8xi1> to vector<2x8x8xi1>
    %18 = vector.broadcast %15 : vector<2x1x8xi1> to vector<2x8x8xi1>
    %19 = arith.andi %17, %18 : vector<2x8x8xi1>
    %20 = vector.extract_strided_slice %7 {offsets = [0, 0], sizes = [16, 16], strides = [1, 1]} : vector<16x32xf32> to vector<16x16xf32>
    %21 = vector.shape_cast %20 : vector<16x16xf32> to vector<2x8x16xf32>
    %22 = vector.extract_strided_slice %8 {offsets = [0, 0], sizes = [16, 16], strides = [1, 1]} : vector<16x32xf32> to vector<16x16xf32>
    %23 = vector.shape_cast %22 : vector<16x16xf32> to vector<2x8x16xf32>
    %24 = vector.extract_strided_slice %9 {offsets = [0, 0], sizes = [16, 16], strides = [1, 1]} : vector<16x32xf32> to vector<16x16xf32>
    %25 = vector.shape_cast %24 : vector<16x16xf32> to vector<2x8x16xf32>
    "tpu.trace_start"() <{level = 10 : i32, message = "bld,bmd->blm"}> : () -> ()
    %cst_10 = arith.constant dense<0.000000e+00> : vector<2x8x8xf32>
    %26 = tpu.matmul %21, %23, %cst_10 {dimension_numbers = #tpu.dot_dimension_numbers<[2], [2], [1], [1], [0, 0, 0, 1, 1, 1], [0], [0]>} : vector<2x8x16xf32>, vector<2x8x16xf32>, vector<2x8x8xf32> -> vector<2x8x8xf32>
    %cst_11 = arith.constant -1.000000e+09 : f32
    "tpu.trace_stop"() : () -> ()
    %27 = vector.broadcast %cst_11 : f32 to vector<2x8x8xf32>
    %28 = arith.select %19, %26, %27 : vector<2x8x8xi1>, vector<2x8x8xf32>
    %cst_12 = arith.constant dense<0xFF800000> : vector<2x8xf32>
    %29 = vector.multi_reduction <maximumf>, %28, %cst_12 [2] : vector<2x8x8xf32> to vector<2x8xf32>
    %30 = vector.shape_cast %29 : vector<2x8xf32> to vector<2x8x1xf32>
    %31 = vector.broadcast %30 : vector<2x8x1xf32> to vector<2x8x8xf32>
    %32 = arith.subf %28, %31 : vector<2x8x8xf32>
    %33 = math.exp %32 : vector<2x8x8xf32>
    %cst_13 = arith.constant dense<0.000000e+00> : vector<2x8xf32>
    %34 = vector.multi_reduction <add>, %33, %cst_13 [2] : vector<2x8x8xf32> to vector<2x8xf32>
    %35 = vector.shape_cast %34 : vector<2x8xf32> to vector<2x8x1xf32>
    %36 = tpu.reciprocal %35 {approx = true} : vector<2x8x1xf32> -> vector<2x8x1xf32>
    %37 = vector.broadcast %36 : vector<2x8x1xf32> to vector<2x8x8xf32>
    %38 = arith.mulf %33, %37 : vector<2x8x8xf32>
    "tpu.trace_start"() <{level = 10 : i32, message = "blm,bmd->bld"}> : () -> ()
    %cst_14 = arith.constant dense<0.000000e+00> : vector<2x8x16xf32>
    %39 = tpu.matmul %38, %25, %cst_14 {dimension_numbers = #tpu.dot_dimension_numbers<[2], [1], [1], [2], [0, 0, 0, 1, 1, 2], [0], [0]>} : vector<2x8x8xf32>, vector<2x8x16xf32>, vector<2x8x16xf32> -> vector<2x8x16xf32>
    "tpu.trace_stop"() : () -> ()
    %40 = vector.extract_strided_slice %7 {offsets = [0, 16], sizes = [16, 16], strides = [1, 1]} : vector<16x32xf32> to vector<16x16xf32>
    %41 = vector.shape_cast %40 : vector<16x16xf32> to vector<2x8x16xf32>
    %42 = vector.extract_strided_slice %8 {offsets = [0, 16], sizes = [16, 16], strides = [1, 1]} : vector<16x32xf32> to vector<16x16xf32>
    %43 = vector.shape_cast %42 : vector<16x16xf32> to vector<2x8x16xf32>
    %44 = vector.extract_strided_slice %9 {offsets = [0, 16], sizes = [16, 16], strides = [1, 1]} : vector<16x32xf32> to vector<16x16xf32>
    %45 = vector.shape_cast %44 : vector<16x16xf32> to vector<2x8x16xf32>
    "tpu.trace_start"() <{level = 10 : i32, message = "bld,bmd->blm"}> : () -> ()
    %cst_15 = arith.constant dense<0.000000e+00> : vector<2x8x8xf32>
    %46 = tpu.matmul %41, %43, %cst_15 {dimension_numbers = #tpu.dot_dimension_numbers<[2], [2], [1], [1], [0, 0, 0, 1, 1, 1], [0], [0]>} : vector<2x8x16xf32>, vector<2x8x16xf32>, vector<2x8x8xf32> -> vector<2x8x8xf32>
    %cst_16 = arith.constant -1.000000e+09 : f32
    "tpu.trace_stop"() : () -> ()
    %47 = vector.broadcast %cst_16 : f32 to vector<2x8x8xf32>
    %48 = arith.select %19, %46, %47 : vector<2x8x8xi1>, vector<2x8x8xf32>
    %cst_17 = arith.constant dense<0xFF800000> : vector<2x8xf32>
    %49 = vector.multi_reduction <maximumf>, %48, %cst_17 [2] : vector<2x8x8xf32> to vector<2x8xf32>
    %50 = vector.shape_cast %49 : vector<2x8xf32> to vector<2x8x1xf32>
    %51 = vector.broadcast %50 : vector<2x8x1xf32> to vector<2x8x8xf32>
    %52 = arith.subf %48, %51 : vector<2x8x8xf32>
    %53 = math.exp %52 : vector<2x8x8xf32>
    %cst_18 = arith.constant dense<0.000000e+00> : vector<2x8xf32>
    %54 = vector.multi_reduction <add>, %53, %cst_18 [2] : vector<2x8x8xf32> to vector<2x8xf32>
    %55 = vector.shape_cast %54 : vector<2x8xf32> to vector<2x8x1xf32>
    %56 = tpu.reciprocal %55 {approx = true} : vector<2x8x1xf32> -> vector<2x8x1xf32>
    %57 = vector.broadcast %56 : vector<2x8x1xf32> to vector<2x8x8xf32>
    %58 = arith.mulf %53, %57 : vector<2x8x8xf32>
    "tpu.trace_start"() <{level = 10 : i32, message = "blm,bmd->bld"}> : () -> ()
    %cst_19 = arith.constant dense<0.000000e+00> : vector<2x8x16xf32>
    %59 = tpu.matmul %58, %45, %cst_19 {dimension_numbers = #tpu.dot_dimension_numbers<[2], [1], [1], [2], [0, 0, 0, 1, 1, 2], [0], [0]>} : vector<2x8x8xf32>, vector<2x8x16xf32>, vector<2x8x16xf32> -> vector<2x8x16xf32>
    "tpu.trace_stop"() : () -> ()
    %60 = tpu.concatenate %39, %59 in 2 : vector<2x8x16xf32>, vector<2x8x16xf32> -> vector<2x8x32xf32>
    %61 = vector.shape_cast %60 : vector<2x8x32xf32> to vector<16x32xf32>
    %c0_20 = arith.constant 0 : index
    %c0_21 = arith.constant 0 : index
    %62 = vector.load %arg5[%c0_20, %c0_21] : memref<32x32xf32, #tpu.memory_space<vmem>>, vector<32x32xf32>
    %cst_22 = arith.constant dense<0.000000e+00> : vector<16x32xf32>
    %63 = tpu.matmul %61, %62, %cst_22 {dimension_numbers = #tpu.dot_dimension_numbers<[1], [0], [0], [1], [0, 0, 1, 1], [], []>} : vector<16x32xf32>, vector<32x32xf32>, vector<16x32xf32> -> vector<16x32xf32>
    %c0_23 = arith.constant 0 : index
    %c0_24 = arith.constant 0 : index
    %64 = vector.load %arg6[%c0_23, %c0_24] : memref<1x32xf32, #tpu.memory_space<vmem>>, vector<1x32xf32>
    %65 = vector.broadcast %64 : vector<1x32xf32> to vector<16x32xf32>
    %66 = arith.addf %63, %65 : vector<16x32xf32>
    %c0_25 = arith.constant 0 : index
    %c0_26 = arith.constant 0 : index
    %67 = vector.load %arg15[%c0_25, %c0_26] : memref<32x8xf32, #tpu.memory_space<vmem>>, vector<32x8xf32>
    %cst_27 = arith.constant dense<0.000000e+00> : vector<16x8xf32>
    %68 = tpu.matmul %66, %67, %cst_27 {dimension_numbers = #tpu.dot_dimension_numbers<[1], [0], [0], [1], [0, 0, 1, 1], [], []>} : vector<16x32xf32>, vector<32x8xf32>, vector<16x8xf32> -> vector<16x8xf32>
    %c0_28 = arith.constant 0 : index
    %c0_29 = arith.constant 0 : index
    %69 = vector.load %arg16[%c0_28, %c0_29] : memref<1x8xf32, #tpu.memory_space<vmem>>, vector<1x8xf32>
    %70 = vector.broadcast %69 : vector<1x8xf32> to vector<16x8xf32>
    %71 = arith.addf %68, %70 : vector<16x8xf32>
    %72 = arith.mulf %71, %71 : vector<16x8xf32>
    %73 = arith.mulf %71, %72 : vector<16x8xf32>
    %cst_30 = arith.constant 4.471500e-02 : f32
    %74 = vector.broadcast %cst_30 : f32 to vector<16x8xf32>
    %75 = arith.mulf %74, %73 : vector<16x8xf32>
    %76 = arith.addf %71, %75 : vector<16x8xf32>
    %cst_31 = arith.constant 0.797884583 : f32
    %77 = vector.broadcast %cst_31 : f32 to vector<16x8xf32>
    %78 = arith.mulf %77, %76 : vector<16x8xf32>
    %79 = math.tanh %78 : vector<16x8xf32>
    %cst_32 = arith.constant 1.000000e+00 : f32
    %80 = vector.broadcast %cst_32 : f32 to vector<16x8xf32>
    %81 = arith.addf %80, %79 : vector<16x8xf32>
    %cst_33 = arith.constant 5.000000e-01 : f32
    %82 = vector.broadcast %cst_33 : f32 to vector<16x8xf32>
    %83 = arith.mulf %82, %81 : vector<16x8xf32>
    %84 = arith.mulf %71, %83 : vector<16x8xf32>
    %c0_34 = arith.constant 0 : index
    %c0_35 = arith.constant 0 : index
    %85 = vector.load %arg17[%c0_34, %c0_35] : memref<8x32xf32, #tpu.memory_space<vmem>>, vector<8x32xf32>
    %cst_36 = arith.constant dense<0.000000e+00> : vector<16x32xf32>
    %86 = tpu.matmul %84, %85, %cst_36 {dimension_numbers = #tpu.dot_dimension_numbers<[1], [0], [0], [1], [0, 0, 1, 1], [], []>} : vector<16x8xf32>, vector<8x32xf32>, vector<16x32xf32> -> vector<16x32xf32>
    %87 = arith.addf %66, %86 : vector<16x32xf32>
    %c0_37 = arith.constant 0 : index
    %c0_38 = arith.constant 0 : index
    %88 = vector.load %arg18[%c0_37, %c0_38] : memref<1x32xf32, #tpu.memory_space<vmem>>, vector<1x32xf32>
    %89 = vector.broadcast %88 : vector<1x32xf32> to vector<16x32xf32>
    %90 = arith.addf %87, %89 : vector<16x32xf32>
    %91 = arith.addf %1, %90 : vector<16x32xf32>
    %c0_39 = arith.constant 0 : index
    %c0_40 = arith.constant 0 : index
    %92 = vector.load %arg7[%c0_39, %c0_40] : memref<1x32xf32, #tpu.memory_space<vmem>>, vector<1x32xf32>
    %c0_41 = arith.constant 0 : index
    %c0_42 = arith.constant 0 : index
    %93 = vector.load %arg8[%c0_41, %c0_42] : memref<1x32xf32, #tpu.memory_space<vmem>>, vector<1x32xf32>
    %cst_43 = arith.constant dense<0.000000e+00> : vector<16xf32>
    %94 = vector.multi_reduction <add>, %91, %cst_43 [1] : vector<16x32xf32> to vector<16xf32>
    %95 = vector.shape_cast %94 : vector<16xf32> to vector<16x1xf32>
    %cst_44 = arith.constant 3.200000e+01 : f32
    %96 = vector.broadcast %cst_44 : f32 to vector<16x1xf32>
    %97 = arith.divf %95, %96 : vector<16x1xf32>
    %98 = vector.broadcast %97 : vector<16x1xf32> to vector<16x32xf32>
    %99 = arith.subf %91, %98 : vector<16x32xf32>
    %100 = arith.mulf %99, %99 : vector<16x32xf32>
    %cst_45 = arith.constant dense<0.000000e+00> : vector<16xf32>
    %101 = vector.multi_reduction <add>, %100, %cst_45 [1] : vector<16x32xf32> to vector<16xf32>
    %102 = vector.shape_cast %101 : vector<16xf32> to vector<16x1xf32>
    %cst_46 = arith.constant 3.200000e+01 : f32
    %103 = vector.broadcast %cst_46 : f32 to vector<16x1xf32>
    %104 = arith.divf %102, %103 : vector<16x1xf32>
    %105 = vector.broadcast %97 : vector<16x1xf32> to vector<16x32xf32>
    %106 = arith.subf %91, %105 : vector<16x32xf32>
    %cst_47 = arith.constant 9.99999997E-7 : f32
    %107 = vector.broadcast %cst_47 : f32 to vector<16x1xf32>
    %108 = arith.addf %104, %107 : vector<16x1xf32>
    %109 = math.rsqrt %108 : vector<16x1xf32>
    %110 = vector.broadcast %109 : vector<16x1xf32> to vector<16x32xf32>
    %111 = arith.mulf %106, %110 : vector<16x32xf32>
    %112 = vector.broadcast %92 : vector<1x32xf32> to vector<16x32xf32>
    %113 = arith.mulf %111, %112 : vector<16x32xf32>
    %114 = vector.broadcast %93 : vector<1x32xf32> to vector<16x32xf32>
    %115 = arith.addf %113, %114 : vector<16x32xf32>
    %c0_48 = arith.constant 0 : index
    %c0_49 = arith.constant 0 : index
    %116 = vector.load %arg9[%c0_48, %c0_49] : memref<32x64xf32, #tpu.memory_space<vmem>>, vector<32x64xf32>
    %cst_50 = arith.constant dense<0.000000e+00> : vector<16x64xf32>
    %117 = tpu.matmul %115, %116, %cst_50 {dimension_numbers = #tpu.dot_dimension_numbers<[1], [0], [0], [1], [0, 0, 1, 1], [], []>} : vector<16x32xf32>, vector<32x64xf32>, vector<16x64xf32> -> vector<16x64xf32>
    %c0_51 = arith.constant 0 : index
    %c0_52 = arith.constant 0 : index
    %118 = vector.load %arg10[%c0_51, %c0_52] : memref<1x64xf32, #tpu.memory_space<vmem>>, vector<1x64xf32>
    %119 = vector.broadcast %118 : vector<1x64xf32> to vector<16x64xf32>
    %120 = arith.addf %117, %119 : vector<16x64xf32>
    %121 = arith.mulf %120, %120 : vector<16x64xf32>
    %122 = arith.mulf %120, %121 : vector<16x64xf32>
    %cst_53 = arith.constant 4.471500e-02 : f32
    %123 = vector.broadcast %cst_53 : f32 to vector<16x64xf32>
    %124 = arith.mulf %123, %122 : vector<16x64xf32>
    %125 = arith.addf %120, %124 : vector<16x64xf32>
    %cst_54 = arith.constant 0.797884583 : f32
    %126 = vector.broadcast %cst_54 : f32 to vector<16x64xf32>
    %127 = arith.mulf %126, %125 : vector<16x64xf32>
    %128 = math.tanh %127 : vector<16x64xf32>
    %cst_55 = arith.constant 1.000000e+00 : f32
    %129 = vector.broadcast %cst_55 : f32 to vector<16x64xf32>
    %130 = arith.addf %129, %128 : vector<16x64xf32>
    %cst_56 = arith.constant 5.000000e-01 : f32
    %131 = vector.broadcast %cst_56 : f32 to vector<16x64xf32>
    %132 = arith.mulf %131, %130 : vector<16x64xf32>
    %133 = arith.mulf %120, %132 : vector<16x64xf32>
    %c0_57 = arith.constant 0 : index
    %c0_58 = arith.constant 0 : index
    %134 = vector.load %arg11[%c0_57, %c0_58] : memref<64x32xf32, #tpu.memory_space<vmem>>, vector<64x32xf32>
    %cst_59 = arith.constant dense<0.000000e+00> : vector<16x32xf32>
    %135 = tpu.matmul %133, %134, %cst_59 {dimension_numbers = #tpu.dot_dimension_numbers<[1], [0], [0], [1], [0, 0, 1, 1], [], []>} : vector<16x64xf32>, vector<64x32xf32>, vector<16x32xf32> -> vector<16x32xf32>
    %c0_60 = arith.constant 0 : index
    %c0_61 = arith.constant 0 : index
    %136 = vector.load %arg12[%c0_60, %c0_61] : memref<1x32xf32, #tpu.memory_space<vmem>>, vector<1x32xf32>
    %137 = vector.broadcast %136 : vector<1x32xf32> to vector<16x32xf32>
    %138 = arith.addf %135, %137 : vector<16x32xf32>
    %c0_62 = arith.constant 0 : index
    %c0_63 = arith.constant 0 : index
    %139 = vector.load %arg19[%c0_62, %c0_63] : memref<32x8xf32, #tpu.memory_space<vmem>>, vector<32x8xf32>
    %cst_64 = arith.constant dense<0.000000e+00> : vector<16x8xf32>
    %140 = tpu.matmul %138, %139, %cst_64 {dimension_numbers = #tpu.dot_dimension_numbers<[1], [0], [0], [1], [0, 0, 1, 1], [], []>} : vector<16x32xf32>, vector<32x8xf32>, vector<16x8xf32> -> vector<16x8xf32>
    %c0_65 = arith.constant 0 : index
    %c0_66 = arith.constant 0 : index
    %141 = vector.load %arg20[%c0_65, %c0_66] : memref<1x8xf32, #tpu.memory_space<vmem>>, vector<1x8xf32>
    %142 = vector.broadcast %141 : vector<1x8xf32> to vector<16x8xf32>
    %143 = arith.addf %140, %142 : vector<16x8xf32>
    %144 = arith.mulf %143, %143 : vector<16x8xf32>
    %145 = arith.mulf %143, %144 : vector<16x8xf32>
    %cst_67 = arith.constant 4.471500e-02 : f32
    %146 = vector.broadcast %cst_67 : f32 to vector<16x8xf32>
    %147 = arith.mulf %146, %145 : vector<16x8xf32>
    %148 = arith.addf %143, %147 : vector<16x8xf32>
    %cst_68 = arith.constant 0.797884583 : f32
    %149 = vector.broadcast %cst_68 : f32 to vector<16x8xf32>
    %150 = arith.mulf %149, %148 : vector<16x8xf32>
    %151 = math.tanh %150 : vector<16x8xf32>
    %cst_69 = arith.constant 1.000000e+00 : f32
    %152 = vector.broadcast %cst_69 : f32 to vector<16x8xf32>
    %153 = arith.addf %152, %151 : vector<16x8xf32>
    %cst_70 = arith.constant 5.000000e-01 : f32
    %154 = vector.broadcast %cst_70 : f32 to vector<16x8xf32>
    %155 = arith.mulf %154, %153 : vector<16x8xf32>
    %156 = arith.mulf %143, %155 : vector<16x8xf32>
    %c0_71 = arith.constant 0 : index
    %c0_72 = arith.constant 0 : index
    %157 = vector.load %arg21[%c0_71, %c0_72] : memref<8x32xf32, #tpu.memory_space<vmem>>, vector<8x32xf32>
    %cst_73 = arith.constant dense<0.000000e+00> : vector<16x32xf32>
    %158 = tpu.matmul %156, %157, %cst_73 {dimension_numbers = #tpu.dot_dimension_numbers<[1], [0], [0], [1], [0, 0, 1, 1], [], []>} : vector<16x8xf32>, vector<8x32xf32>, vector<16x32xf32> -> vector<16x32xf32>
    %159 = arith.addf %138, %158 : vector<16x32xf32>
    %c0_74 = arith.constant 0 : index
    %c0_75 = arith.constant 0 : index
    %160 = vector.load %arg22[%c0_74, %c0_75] : memref<1x32xf32, #tpu.memory_space<vmem>>, vector<1x32xf32>
    %161 = vector.broadcast %160 : vector<1x32xf32> to vector<16x32xf32>
    %162 = arith.addf %159, %161 : vector<16x32xf32>
    %163 = arith.addf %115, %162 : vector<16x32xf32>
    %c0_76 = arith.constant 0 : index
    %c0_77 = arith.constant 0 : index
    %164 = vector.load %arg13[%c0_76, %c0_77] : memref<1x32xf32, #tpu.memory_space<vmem>>, vector<1x32xf32>
    %c0_78 = arith.constant 0 : index
    %c0_79 = arith.constant 0 : index
    %165 = vector.load %arg14[%c0_78, %c0_79] : memref<1x32xf32, #tpu.memory_space<vmem>>, vector<1x32xf32>
    %cst_80 = arith.constant dense<0.000000e+00> : vector<16xf32>
    %166 = vector.multi_reduction <add>, %163, %cst_80 [1] : vector<16x32xf32> to vector<16xf32>
    %167 = vector.shape_cast %166 : vector<16xf32> to vector<16x1xf32>
    %cst_81 = arith.constant 3.200000e+01 : f32
    %168 = vector.broadcast %cst_81 : f32 to vector<16x1xf32>
    %169 = arith.divf %167, %168 : vector<16x1xf32>
    %170 = vector.broadcast %169 : vector<16x1xf32> to vector<16x32xf32>
    %171 = arith.subf %163, %170 : vector<16x32xf32>
    %172 = arith.mulf %171, %171 : vector<16x32xf32>
    %cst_82 = arith.constant dense<0.000000e+00> : vector<16xf32>
    %173 = vector.multi_reduction <add>, %172, %cst_82 [1] : vector<16x32xf32> to vector<16xf32>
    %174 = vector.shape_cast %173 : vector<16xf32> to vector<16x1xf32>
    %cst_83 = arith.constant 3.200000e+01 : f32
    %175 = vector.broadcast %cst_83 : f32 to vector<16x1xf32>
    %176 = arith.divf %174, %175 : vector<16x1xf32>
    %177 = vector.broadcast %169 : vector<16x1xf32> to vector<16x32xf32>
    %178 = arith.subf %163, %177 : vector<16x32xf32>
    %cst_84 = arith.constant 9.99999997E-7 : f32
    %179 = vector.broadcast %cst_84 : f32 to vector<16x1xf32>
    %180 = arith.addf %176, %179 : vector<16x1xf32>
    %181 = math.rsqrt %180 : vector<16x1xf32>
    %182 = vector.broadcast %181 : vector<16x1xf32> to vector<16x32xf32>
    %183 = arith.mulf %178, %182 : vector<16x32xf32>
    %184 = vector.broadcast %164 : vector<1x32xf32> to vector<16x32xf32>
    %185 = arith.mulf %183, %184 : vector<16x32xf32>
    %186 = vector.broadcast %165 : vector<1x32xf32> to vector<16x32xf32>
    %187 = arith.addf %185, %186 : vector<16x32xf32>
    %188 = vector.shape_cast %187 : vector<16x32xf32> to vector<2x8x32xf32>
    %c0_85 = arith.constant 0 : index
    %c0_86 = arith.constant 0 : index
    %c0_87 = arith.constant 0 : index
    %189 = vector.load %arg23[%c0_85, %c0_86, %c0_87] : memref<2x8x32xf32, #tpu.memory_space<vmem>>, vector<2x8x32xf32>
    tpu.vector_store %arg23[%c0_85, %c0_86, %c0_87], %188 {strides = array<i32>} : memref<2x8x32xf32, #tpu.memory_space<vmem>>, vector<2x8x32xf32>,
    return
  }
  func.func @transform_0(%arg0: i32) -> (i32, i32, i32) {
    %c0_i32 = arith.constant 0 : i32
    %c0_i32_0 = arith.constant 0 : i32
    %c0_i32_1 = arith.constant 0 : i32
    return %arg0, %c0_i32, %c0_i32_0 : i32, i32, i32
  }
  func.func @transform_1(%arg0: i32) -> (i32, i32, i32) {
    %c0_i32 = arith.constant 0 : i32
    %c0_i32_0 = arith.constant 0 : i32
    %c0_i32_1 = arith.constant 0 : i32
    return %arg0, %c0_i32, %c0_i32_0 : i32, i32, i32
  }
  func.func @transform_2(%arg0: i32) -> (i32, i32) {
    %c0_i32 = arith.constant 0 : i32
    %c0_i32_0 = arith.constant 0 : i32
    %c0_i32_1 = arith.constant 0 : i32
    return %c0_i32, %c0_i32_0 : i32, i32
  }
  func.func @transform_3(%arg0: i32) -> (i32, i32) {
    %c0_i32 = arith.constant 0 : i32
    %c0_i32_0 = arith.constant 0 : i32
    %c0_i32_1 = arith.constant 0 : i32
    return %c0_i32, %c0_i32_0 : i32, i32
  }
  func.func @transform_4(%arg0: i32) -> (i32, i32) {
    %c0_i32 = arith.constant 0 : i32
    %c0_i32_0 = arith.constant 0 : i32
    %c0_i32_1 = arith.constant 0 : i32
    return %c0_i32, %c0_i32_0 : i32, i32
  }
  func.func @transform_5(%arg0: i32) -> (i32, i32) {
    %c0_i32 = arith.constant 0 : i32
    %c0_i32_0 = arith.constant 0 : i32
    %c0_i32_1 = arith.constant 0 : i32
    return %c0_i32, %c0_i32_0 : i32, i32
  }
  func.func @transform_6(%arg0: i32) -> (i32, i32) {
    %c0_i32 = arith.constant 0 : i32
    %c0_i32_0 = arith.constant 0 : i32
    %c0_i32_1 = arith.constant 0 : i32
    return %c0_i32, %c0_i32_0 : i32, i32
  }
  func.func @transform_7(%arg0: i32) -> (i32, i32) {
    %c0_i32 = arith.constant 0 : i32
    %c0_i32_0 = arith.constant 0 : i32
    %c0_i32_1 = arith.constant 0 : i32
    return %c0_i32, %c0_i32_0 : i32, i32
  }
  func.func @transform_8(%arg0: i32) -> (i32, i32) {
    %c0_i32 = arith.constant 0 : i32
    %c0_i32_0 = arith.constant 0 : i32
    %c0_i32_1 = arith.constant 0 : i32
    return %c0_i32, %c0_i32_0 : i32, i32
  }
  func.func @transform_9(%arg0: i32) -> (i32, i32) {
    %c0_i32 = arith.constant 0 : i32
    %c0_i32_0 = arith.constant 0 : i32
    %c0_i32_1 = arith.constant 0 : i32
    return %c0_i32, %c0_i32_0 : i32, i32
  }
  func.func @transform_10(%arg0: i32) -> (i32, i32) {
    %c0_i32 = arith.constant 0 : i32
    %c0_i32_0 = arith.constant 0 : i32
    %c0_i32_1 = arith.constant 0 : i32
    return %c0_i32, %c0_i32_0 : i32, i32
  }
  func.func @transform_11(%arg0: i32) -> (i32, i32) {
    %c0_i32 = arith.constant 0 : i32
    %c0_i32_0 = arith.constant 0 : i32
    %c0_i32_1 = arith.constant 0 : i32
    return %c0_i32, %c0_i32_0 : i32, i32
  }
  func.func @transform_12(%arg0: i32) -> (i32, i32) {
    %c0_i32 = arith.constant 0 : i32
    %c0_i32_0 = arith.constant 0 : i32
    %c0_i32_1 = arith.constant 0 : i32
    return %c0_i32, %c0_i32_0 : i32, i32
  }
  func.func @transform_13(%arg0: i32) -> (i32, i32) {
    %c0_i32 = arith.constant 0 : i32
    %c0_i32_0 = arith.constant 0 : i32
    %c0_i32_1 = arith.constant 0 : i32
    return %c0_i32, %c0_i32_0 : i32, i32
  }
  func.func @transform_14(%arg0: i32) -> (i32, i32) {
    %c0_i32 = arith.constant 0 : i32
    %c0_i32_0 = arith.constant 0 : i32
    %c0_i32_1 = arith.constant 0 : i32
    return %c0_i32, %c0_i32_0 : i32, i32
  }
  func.func @transform_15(%arg0: i32) -> (i32, i32) {
    %c0_i32 = arith.constant 0 : i32
    %c0_i32_0 = arith.constant 0 : i32
    %c0_i32_1 = arith.constant 0 : i32
    return %c0_i32, %c0_i32_0 : i32, i32
  }
  func.func @transform_16(%arg0: i32) -> (i32, i32) {
    %c0_i32 = arith.constant 0 : i32
    %c0_i32_0 = arith.constant 0 : i32
    %c0_i32_1 = arith.constant 0 : i32
    return %c0_i32, %c0_i32_0 : i32, i32
  }
  func.func @transform_17(%arg0: i32) -> (i32, i32) {
    %c0_i32 = arith.constant 0 : i32
    %c0_i32_0 = arith.constant 0 : i32
    %c0_i32_1 = arith.constant 0 : i32
    return %c0_i32, %c0_i32_0 : i32, i32
  }
  func.func @transform_18(%arg0: i32) -> (i32, i32) {
    %c0_i32 = arith.constant 0 : i32
    %c0_i32_0 = arith.constant 0 : i32
    %c0_i32_1 = arith.constant 0 : i32
    return %c0_i32, %c0_i32_0 : i32, i32
  }
  func.func @transform_19(%arg0: i32) -> (i32, i32) {
    %c0_i32 = arith.constant 0 : i32
    %c0_i32_0 = arith.constant 0 : i32
    %c0_i32_1 = arith.constant 0 : i32
    return %c0_i32, %c0_i32_0 : i32, i32
  }
  func.func @transform_20(%arg0: i32) -> (i32, i32) {
    %c0_i32 = arith.constant 0 : i32
    %c0_i32_0 = arith.constant 0 : i32
    %c0_i32_1 = arith.constant 0 : i32
    return %c0_i32, %c0_i32_0 : i32, i32
  }
  func.func @transform_21(%arg0: i32) -> (i32, i32) {
    %c0_i32 = arith.constant 0 : i32
    %c0_i32_0 = arith.constant 0 : i32
    %c0_i32_1 = arith.constant 0 : i32
    return %c0_i32, %c0_i32_0 : i32, i32
  }
  func.func @transform_22(%arg0: i32) -> (i32, i32, i32) {
    %c0_i32 = arith.constant 0 : i32
    %c0_i32_0 = arith.constant 0 : i32
    %c0_i32_1 = arith.constant 0 : i32
    return %arg0, %c0_i32, %c0_i32_0 : i32, i32, i32
  }
}

</mosaic_0001>

<bundles_post_ra>
// kernel: tpu_custom_call.1
= control target key start
LH: loop header
LB: loop body
LE: loop exit
PB: predicated region body
PF: predicated region fallthrough
CT: control target
= control target key end

     0   :  { %s2370_s0 = inlined_call_operand.vmem [shape: f32[2,8,32], index: 0, kind: input, shape index: {}]   ;;  %s2371_s1 = inlined_call_operand.vmem [shape: f32[2,1,8], index: 1, kind: input, shape index: {}]   ;;  %s2372_s2 = inlined_call_operand.vmem [shape: f32[32,96], index: 2, kind: input, shape index: {}]   ;;  %s2373_s3 = inlined_call_operand.vmem [shape: f32[1,96], index: 3, kind: input, shape index: {}]   ;;  %s2374_s4 = inlined_call_operand.vmem [shape: f32[32,32], index: 4, kind: input, shape index: {}]   ;;  %s2375_s5 = inlined_call_operand.vmem [shape: f32[1,32], index: 5, kind: input, shape index: {}]   ;;  %s2376_s6 = inlined_call_operand.vmem [shape: f32[1,32], index: 6, kind: input, shape index: {}]   ;;  %s2377_s7 = inlined_call_operand.vmem [shape: f32[1,32], index: 7, kind: input, shape index: {}]   ;;  %s2378_s8 = inlined_call_operand.vmem [shape: f32[32,64], index: 8, kind: input, shape index: {}]   ;;  %s2379_s9 = inlined_call_operand.vmem [shape: f32[1,64], index: 9, kind: input, shape index: {}]   ;;  %s2380_s10 = inlined_call_operand.vmem [shape: f32[64,32], index: 10, kind: input, shape index: {}]   ;;  %s2381_s11 = inlined_call_operand.vmem [shape: f32[1,32], index: 11, kind: input, shape index: {}]   ;;  %s2382_s12 = inlined_call_operand.vmem [shape: f32[1,32], index: 12, kind: input, shape index: {}]   ;;  %s2383_s13 = inlined_call_operand.vmem [shape: f32[1,32], index: 13, kind: input, shape index: {}]   ;;  %s2384_s14 = inlined_call_operand.vmem [shape: f32[32,8], index: 14, kind: input, shape index: {}]   ;;  %s2385_s15 = inlined_call_operand.vmem [shape: f32[1,8], index: 15, kind: input, shape index: {}]   ;;  %s2386_s16 = inlined_call_operand.vmem [shape: f32[8,32], index: 16, kind: input, shape index: {}]   ;;  %s2387_s17 = inlined_call_operand.vmem [shape: f32[1,32], index: 17, kind: input, shape index: {}]   ;;  %s2388_s18 = inlined_call_operand.vmem [shape: f32[32,8], index: 18, kind: input, shape index: {}]   ;;  %s2389_s19 = inlined_call_operand.vmem [shape: f32[1,8], index: 19, kind: input, shape index: {}]   ;;  %s2390_s20 = inlined_call_operand.vmem [shape: f32[8,32], index: 20, kind: input, shape index: {}]   ;;  %s2391_s21 = inlined_call_operand.vmem [shape: f32[1,32], index: 21, kind: input, shape index: {}]   ;;  %s2392_s22 = inlined_call_operand.hbm [shape: f32[2,8,32], index: 22, kind: output, shape index: {}]  }
   0x1   :  { %2397 = sst [smem:[#allocation5_spill]] %s2370_s0 }
   0x2   :  { %2398 = sst [smem:[#allocation6_spill]] %s2371_s1 }
   0x3   :  { %2399 = sst [smem:[#allocation7_spill]] %s2372_s2 }
   0x4   :  { %2400 = sst [smem:[#allocation8_spill]] %s2373_s3 }
   0x5   :  { %2401 = sst [smem:[#allocation9_spill]] %s2374_s4 }
   0x6   :  { %2402 = sst [smem:[#allocation10_spill]] %s2375_s5 }
   0x7   :  { %2403 = sst [smem:[#allocation11_spill]] %s2376_s6 }
   0x8   :  { %s2404_s29 = sld [smem:[#allocation7_spill]]  ;;  %vm85_vm0 = vcmask 261120  }
   0x9   :  { %s2405_s1 = sld [smem:[#allocation5_spill]] }
   0xe   :  { %v77_v0 = vld [vmem:[%s2404_s29 + $0x18] sm:$0xff]  ;;  %v76_v1 = vld [vmem:[%s2404_s29 + $0x10] sm:$0xff]  ;;  %v75_v3 = vld [vmem:[%s2404_s29 + $0x8] sm:$0xff] }
   0xf   :  { %1784 = vmatprep.subr.mxu0 %v77_v0  ;;  %v2114_v2 = vld [vmem:[%s2405_s1] sm:$0xff] }
  0x10   :  { %1785 = vmatpush3.msra.mxu0 %v77_v0  ;;  %1792 = vmatprep.mubr.msk.f32.mxu0 %vm85_vm0, %v2114_v2 }
  0x11   :  { %27 = vsyncpa [#allocation3], 0  ;;  %1786 = vmatprep.subr.mxu0 %v76_v1  ;;  %v74_v4 = vld [vmem:[%s2404_s29] sm:$0xff]  ;;  %v2127_v5 = vld [vmem:[%s2405_s1 + $0x8] sm:$0xff]  ;;  %v1978_v6 = vmov 0.0   ;;  %vm1979_vm1 = vmmov 0   ;;  %v167_v14 = vlaneseq }
  0x12   :  { %1787 = vmatpush3.msra.mxu0 %v76_v1  ;;  %1795 = vmatprep.subr.mxu1 %v1978_v6  ;;  %s2406_s28 = sld [smem:[#allocation8_spill]]  ;;  %s1980_s29 = smov 96   ;;  %vm195_vm2 = vcmask 130048   ;;  %v1981_v19 = vmov 0   ;;  %vm349_vm8 = vcmask 64512   ;;  %vm1333_vm11 = vcmask 523264  }
  0x13   :  { %1788 = vmatprep.subr.mxu0 %v75_v3  ;;  %1797 = vmatprep.mubr.msk.f32.mxu1 %vm1979_vm1, %v1978_v6  ;;  %s2407_s0 = sld [smem:[#allocation6_spill]]  ;;  %v168_v16 = vshrl.u32 %v167_v14, 7  ;;  %v170_v21 = vand.u32 127, %v167_v14  ;;  %s1982_s5 = smov 64  }
  0x14   :  { %1789 = vmatpush3.msra.mxu0 %v75_v3  ;;  %s1983_s24 = smov 80   ;;  %s1984_s6 = smov 112  }
  0x15   :  { %1790 = vmatprep.subr.mxu0 %v74_v4  ;;  %v182_v18 = vsub.s32 0, %v168_v16  ;;  %vm171_vm5 = vcmp.ge.s32.totalorder %v168_v16, %v170_v21  ;;  %s1985_s25 = smov 48   ;;  %s2412_s27 = sld [smem:[#allocation9_spill]] }
  0x16   :  { %1791 = vmatpush3.msra.mxu0 %v74_v4  ;;  %s2414_s3 = sld [smem:[#allocation11_spill]]  ;;  %s1987_s1 = smov [#allocation2]  }
  0x17   :  { %1793 = vmatmul.mubr.msk.f32.vlgmr.msra.gmra.mxu0 %vm85_vm0, %v2127_v5  ;;  %1805 = vmatprep.subr.mxu0 %v1978_v6 }
  0x18   :  { %1807 = vmatprep.mubr.msk.f32.mxu0 %vm1979_vm1, %v1978_v6  ;;  %v1682_v8 = vld [vmem:[%s2406_s28] ss:$0 sm:$0xff] }
  0x19   :  { %v172_v15 = vld [vmem:[%s2407_s0] sm:$0x1]  ;;  %v173_v17 = vld [vmem:[%s2407_s0 + $0x1] sm:$0x1] }
  0x1a   :  { %vm174_vm3 = vcmp.ne.f32.partialorder %v172_v15, 0.0  ;;  %vm175_vm4 = vcmp.ne.f32.partialorder %v173_v17, 0.0 }
  0x1b   :  { %v178_v20 = vsel %vm174_vm3, 1, %v1981_v19  ;;  %v179_v23 = vsel %vm175_vm4, 1, %v1981_v19 }
  0x1c   :  { %v183_v22 = vrot.slane %v178_v20, %v182_v18  ;;  %v187_v24 = vrot.slane %v179_v23, %v182_v18 }
  0x1e   :  { %vm188_vm6 = vcmp.eq.s32.totalorder %v183_v22, 1  ;;  %vm189_vm9 = vcmp.eq.s32.totalorder %v187_v24, 1 }
  0x1f   :  { %vm2164_vm7 = vmand %vm171_vm5, %vm188_vm6 }
  0x20   :  { %vm2171_vm10 = vmand %vm171_vm5, %vm189_vm9 }
  0xd7   :  { %v1794_v7 = vpop.f32.mrf.mxu0 }
  0xd8   :  { %v2143_v11 = vadd.f32 %v1794_v7, %v1682_v8 }
  0xd9   :  { %v158_v9 = vpop.f32.mrf.mxu0 }
  0xda   :  { %v2140_v10 = vadd.f32 %v1682_v8, %v158_v9 }
  0xdc   :  { %193 = vrot.lane.b32.xlu0 %v2140_v10, %s1980_s29 }
  0xe0   :  { %271 = vrot.lane.b32.xlu0 %v2143_v11, %s1980_s29  ;;  %s2413_s29 = sld [smem:[#allocation10_spill]] }
 0x14e   :  { %v194_v12 = vpop.permute.xlu0 %193 }
 0x14f   :  { %1796 = vmatpush3.xpose.msk.msra.mxu1 %vm195_vm2, %v194_v12 }
 0x150   :  { %1800 = vmatprep.subr.mxu1 %v1978_v6 }
 0x152   :  { %1798 = vmatmul.mubr.msk.f32.vlgmr.msra.gmra.mxu1 %vm195_vm2, %v2140_v10  ;;  %v272_v13 = vpop.permute.xlu0 %271 }
 0x153   :  { %1801 = vmatpush3.xpose.msk.msra.mxu1 %vm195_vm2, %v272_v13  ;;  %1802 = vmatprep.mubr.msk.f32.mxu1 %vm1979_vm1, %v1978_v6 }
 0x154   :  { %1810 = vmatprep.subr.mxu1 %v1978_v6 }
 0x156   :  { %1803 = vmatmul.mubr.msk.f32.vlgmr.msra.gmra.mxu1 %vm195_vm2, %v2143_v11 }
 0x157   :  { %1812 = vmatprep.mubr.msk.f32.mxu1 %vm1979_vm1, %v1978_v6 }
 0x212   :  { %v266_v26 = vpop.f32.mrf.mxu1 }
 0x213   :  { %v347_v27 = vsel %vm2164_vm7, %v266_v26, -1e+09  ;;  %v869_v26 = vld [vmem:[%s2412_s27 + $0x18] sm:$0xff] }
 0x214   :  { %v1799_v28 = vpop.f32.mrf.mxu1  ;;  %v350_v29 = vsel %vm349_vm8, %v347_v27, -inf }
 0x215   :  { %351 = vmax.xlane.f32.xlu1 %v350_v29  ;;  %v866_v28 = vld [vmem:[%s2412_s27] sm:$0xff]  ;;  %v961_v29 = vld [vmem:[%s2384_s14 + $0x18] sm:$0xff] }
 0x216   :  { %v343_v31 = vpop.f32.mrf.mxu1 }
 0x217   :  { %v348_v32 = vsel %vm2171_vm10, %v343_v31, -1e+09 }
 0x218   :  { %v1804_v33 = vpop.f32.mrf.mxu1  ;;  %v353_v34 = vsel %vm349_vm8, %v348_v32, -inf }
 0x219   :  { %354 = vmax.xlane.f32.xlu1 %v353_v34 }
 0x22a   :  { %372 = vrot.lane.b32.xlu1 %v2140_v10, %s1982_s5 }
 0x22e   :  { %448 = vrot.lane.b32.xlu1 %v2143_v11, %s1982_s5  ;;  %s1986_s5 = smov 16  }
 0x232   :  { %526 = vrot.lane.b32.xlu1 %v2140_v10, %s1983_s24 }
 0x236   :  { %604 = vrot.lane.b32.xlu1 %v2143_v11, %s1983_s24 }
 0x29e   :  { %v352_v35 = vpop.xlane.xlu1 %351 }
 0x29f   :  { %v356_v36 = vsub.f32 %v347_v27, %v352_v35  ;;  %v867_v27 = vld [vmem:[%s2412_s27 + $0x8] sm:$0xff] }
 0x2a1   :  { %v358_v37 = vmul.f32 1.442695, %v356_v36 }
 0x2a2   :  { %v355_v38 = vpop.xlane.xlu1 %354 }
 0x2a3   :  { %1920 = vpow2.f32 %v358_v37  ;;  %v357_v39 = vsub.f32 %v348_v32, %v355_v38  ;;  %v960_v38 = vld [vmem:[%s2384_s14 + $0x10] sm:$0xff] }
 0x2a5   :  { %v360_v40 = vmul.f32 1.442695, %v357_v39  ;;  %v959_v39 = vld [vmem:[%s2384_s14 + $0x8] sm:$0xff] }
 0x2a6   :  { %v373_v41 = vpop.permute.xlu1 %372 }
 0x2a7   :  { %1922 = vpow2.f32 %v360_v40  ;;  %1806 = vmatpush3.msra.mxu0 %v373_v41  ;;  %v958_v40 = vld [vmem:[%s2384_s14] sm:$0xff] }
 0x2a8   :  { %1815 = vmatprep.subr.mxu0 %v1978_v6 }
 0x2aa   :  { %v449_v42 = vpop.permute.xlu1 %448 }
 0x2ab   :  { %1811 = vmatpush3.msra.mxu1 %v449_v42  ;;  %v1697_v42 = vld [vmem:[%s2413_s29] ss:$0 sm:$0xff] }
 0x2ac   :  { %1820 = vmatprep.subr.mxu1 %v1978_v6 }
 0x2ae   :  { %v527_v47 = vpop.permute.xlu1 %526 }
 0x2b0   :  { %v1921_v43 = vpop.eup %1920 }
 0x2b1   :  { %v362_v44 = vsel %vm349_vm8, %v1921_v43, 0.0 }
 0x2b2   :  { %363 = vadd.xlane.f32.xlu0 %v362_v44  ;;  %v605_v48 = vpop.permute.xlu1 %604 }
 0x2b4   :  { %v1923_v45 = vpop.eup %1922 }
 0x2b5   :  { %v365_v46 = vsel %vm349_vm8, %v1923_v45, 0.0 }
 0x2b6   :  { %366 = vadd.xlane.f32.xlu1 %v365_v46  ;;  %v1068_v46 = vld [vmem:[%s2386_s16] sm:$0xff] }
 0x2c7   :  { %602 = vrot.lane.b32.xlu1 %v2143_v11, %s1984_s6 }
 0x2c8   :  { %524 = vrot.lane.b32.xlu0 %v2140_v10, %s1984_s6 }
 0x33b   :  { %v364_v49 = vpop.xlane.xlu0 %363 }
 0x33c   :  { %1924 = vrcp.f32 %v364_v49 }
 0x33f   :  { %v367_v50 = vpop.xlane.xlu1 %366  ;;  %v525_v55 = vpop.permute.xlu0 %524 }
 0x340   :  { %1926 = vrcp.f32 %v367_v50 }
 0x343   :  { %v603_v56 = vpop.permute.xlu1 %602 }
 0x349   :  { %v1925_v51 = vpop.eup %1924 }
 0x34a   :  { %v370_v52 = vmul.f32 %v1925_v51, %v1921_v43 }
 0x34c   :  { %1808 = vmatmul.mubr.msk.f32.vlgmr.msra.gmra.mxu0 %vm349_vm8, %v370_v52 }
 0x34d   :  { %v1927_v53 = vpop.eup %1926  ;;  %1816 = vmatpush3.xpose.msk.msra.mxu0 %vm195_vm2, %v527_v47  ;;  %1817 = vmatprep.mubr.msk.f32.mxu0 %vm1979_vm1, %v1978_v6  ;;  %v1700_v47 = vld [vmem:[%s2385_s15] ss:$0 sm:$0xff] }
 0x34e   :  { %v371_v54 = vmul.f32 %v1927_v53, %v1923_v45  ;;  %1825 = vmatprep.subr.mxu0 %v1978_v6 }
 0x350   :  { %1813 = vmatmul.mubr.msk.f32.vlgmr.msra.gmra.mxu1 %vm349_vm8, %v371_v54  ;;  %1818 = vmatmul.mubr.msk.f32.vlgmr.msra.gmra.mxu0 %vm195_vm2, %v525_v55 }
 0x351   :  { %1821 = vmatpush3.xpose.msk.msra.mxu1 %vm195_vm2, %v605_v48  ;;  %1822 = vmatprep.mubr.msk.f32.mxu1 %vm1979_vm1, %v1978_v6 }
 0x352   :  { %1830 = vmatprep.subr.mxu1 %v1978_v6  ;;  %1827 = vmatprep.mubr.msk.f32.mxu0 %vm1979_vm1, %v1978_v6 }
 0x354   :  { %1823 = vmatmul.mubr.msk.f32.vlgmr.msra.gmra.mxu1 %vm195_vm2, %v603_v56 }
 0x355   :  { %1832 = vmatprep.mubr.msk.f32.mxu1 %vm1979_vm1, %v1978_v6 }
 0x40c   :  { %v2204_v57 = vpop.f32.mrf.mxu0 }
 0x40e   :  { %v1809_v58 = vpop.f32.mrf.mxu0 }
 0x410   :  { %v2206_v59 = vpop.f32.mrf.mxu1  ;;  %v598_v60 = vpop.f32.mrf.mxu0 }
 0x411   :  { %v680_v61 = vsel %vm2164_vm7, %v598_v60, -1e+09 }
 0x412   :  { %v1814_v62 = vpop.f32.mrf.mxu1  ;;  %v1819_v63 = vpop.f32.mrf.mxu0  ;;  %v682_v0 = vsel %vm349_vm8, %v680_v61, -inf }
 0x413   :  { %683 = vmax.xlane.f32.xlu1 %v682_v0 }
 0x414   :  { %v676_v1 = vpop.f32.mrf.mxu1 }
 0x415   :  { %v681_v3 = vsel %vm2171_vm10, %v676_v1, -1e+09 }
 0x416   :  { %v1824_v4 = vpop.f32.mrf.mxu1  ;;  %v685_v6 = vsel %vm349_vm8, %v681_v3, -inf }
 0x417   :  { %686 = vmax.xlane.f32.xlu0 %v685_v6 }
 0x42d   :  { %780 = vrot.lane.b32.xlu0 %v2143_v11, %s1985_s25 }
 0x49c   :  { %v684_v7 = vpop.xlane.xlu1 %683 }
 0x49d   :  { %v688_v8 = vsub.f32 %v680_v61, %v684_v7 }
 0x49f   :  { %v690_v9 = vmul.f32 1.442695, %v688_v8 }
 0x4a0   :  { %v687_v12 = vpop.xlane.xlu0 %686 }
 0x4a1   :  { %1928 = vpow2.f32 %v690_v9  ;;  %v689_v13 = vsub.f32 %v681_v3, %v687_v12  ;;  %v1705_v9 = vld [vmem:[%s2387_s17] ss:$0 sm:$0xff] }
 0x4a3   :  { %v692_v14 = vmul.f32 1.442695, %v689_v13 }
 0x4a4   :  { %v781_v15 = vpop.permute.xlu0 %780 }
 0x4a5   :  { %1930 = vpow2.f32 %v692_v14  ;;  %1831 = vmatpush3.msra.mxu1 %v781_v15 }
 0x4a6   :  { %1846 = vmatprep.subr.mxu1 %v961_v29 }
 0x4ae   :  { %v1929_v16 = vpop.eup %1928 }
 0x4af   :  { %v694_v17 = vsel %vm349_vm8, %v1929_v16, 0.0 }
 0x4b0   :  { %695 = vadd.xlane.f32.xlu1 %v694_v17 }
 0x4b2   :  { %v1931_v18 = vpop.eup %1930 }
 0x4b3   :  { %v697_v19 = vsel %vm349_vm8, %v1931_v18, 0.0 }
 0x4b4   :  { %698 = vadd.xlane.f32.xlu1 %v697_v19 }
 0x4c5   :  { %704 = vrot.lane.b32.xlu1 %v2140_v10, %s1985_s25  ;;  %v868_v10 = vld [vmem:[%s2412_s27 + $0x10] sm:$0xff] }
 0x539   :  { %v696_v11 = vpop.xlane.xlu1 %695 }
 0x53a   :  { %1932 = vrcp.f32 %v696_v11 }
 0x53d   :  { %v699_v20 = vpop.xlane.xlu1 %698 }
 0x53e   :  { %1934 = vrcp.f32 %v699_v20 }
 0x541   :  { %v705_v21 = vpop.permute.xlu1 %704 }
 0x542   :  { %1826 = vmatpush3.msra.mxu0 %v705_v21 }
 0x543   :  { %1835 = vmatprep.subr.mxu0 %v869_v26 }
 0x547   :  { %v1933_v22 = vpop.eup %1932 }
 0x548   :  { %v702_v23 = vmul.f32 %v1933_v22, %v1929_v16 }
 0x54a   :  { %1828 = vmatmul.mubr.msk.f32.vlgmr.msra.gmra.mxu0 %vm349_vm8, %v702_v23 }
 0x54b   :  { %v1935_v24 = vpop.eup %1934  ;;  %1836 = vmatpush3.msra.mxu0 %v869_v26 }
 0x54c   :  { %v703_v25 = vmul.f32 %v1935_v24, %v1931_v18  ;;  %1837 = vmatprep.subr.mxu0 %v868_v10 }
 0x54d   :  { %1838 = vmatpush3.msra.mxu0 %v868_v10 }
 0x54e   :  { %1833 = vmatmul.mubr.msk.f32.vlgmr.msra.gmra.mxu1 %vm349_vm8, %v703_v25  ;;  %1839 = vmatprep.subr.mxu0 %v867_v27 }
 0x54f   :  { %1840 = vmatpush3.msra.mxu0 %v867_v27  ;;  %1847 = vmatpush3.msra.mxu1 %v961_v29  ;;  %v1209_v29 = vld [vmem:[%s2378_s8 + $0x8] sm:$0xff] }
 0x550   :  { %1841 = vmatprep.subr.mxu0 %v866_v28  ;;  %1848 = vmatprep.subr.mxu1 %v960_v38 }
 0x551   :  { %1842 = vmatpush3.msra.mxu0 %v866_v28  ;;  %1849 = vmatpush3.msra.mxu1 %v960_v38  ;;  %v1210_v28 = vld [vmem:[%s2378_s8 + $0x10] sm:$0xff]  ;;  %v1706_v38 = vld [vmem:[%s2414_s3] ss:$0 sm:$0xff] }
 0x552   :  { %1850 = vmatprep.subr.mxu1 %v959_v39  ;;  %1857 = vmatprep.subr.mxu0 %v1068_v46 }
 0x553   :  { %1851 = vmatpush3.msra.mxu1 %v959_v39 }
 0x554   :  { %1852 = vmatprep.subr.mxu1 %v958_v40 }
 0x555   :  { %1853 = vmatpush3.msra.mxu1 %v958_v40  ;;  %v1707_v40 = vld [vmem:[%s2377_s7] ss:$0 sm:$0xff] }
 0x60a   :  { %v776_v30 = vpop.f32.mrf.mxu0 }
 0x60b   :  { %858 = vrot.lane.b32.xlu1 %v776_v30, %s1986_s5  ;;  %v1208_v30 = vld [vmem:[%s2378_s8] sm:$0xff] }
 0x60c   :  { %v1829_v31 = vpop.f32.mrf.mxu0 }
 0x60e   :  { %v852_v32 = vpop.f32.mrf.mxu1 }
 0x60f   :  { %860 = vrot.lane.b32.xlu1 %v852_v32, %s1986_s5  ;;  %s1671_s5 = sshll.u32 %s1987_s1, 4  ;;  %s1672_s5 = int_to_ptr.vmem [resolvable:$true] %s1671_s5 }
 0x610   :  { %v1834_v33 = vpop.f32.mrf.mxu1  ;;  %s1956_s24 = scalar_lea.vmem %s1672_s5, 256  ;;  %p1961_p1 = scmp.lt.s32.totalorder %s1672_s5, %s1672_s5 }
 0x611   :  { %p1957_p0 = scmp.ne.s32.totalorder %s1672_s5, %s1956_s24  ;;  %p1962_p2 = scmp.lt.s32.totalorder %s1956_s24, %s1956_s24 }
 0x613   :  { %p1963_p3 = por %p1962_p2, %p1961_p1 }
 0x615   :  { %p1964_p4 = pnand %p1963_p3, %p1957_p0 }
 0x67d   :  { %v859_v34 = vpop.permute.xlu1 %858 }
 0x67e   :  { %v864_v35 = vsel %vm195_vm2, %v2204_v57, %v859_v34 }
 0x67f   :  { %1843 = vmatprep.mubr.msk.f32.mxu0 %vm85_vm0, %v864_v35 }
 0x681   :  { %v861_v36 = vpop.permute.xlu1 %860 }
 0x682   :  { %v865_v37 = vsel %vm195_vm2, %v2206_v59, %v861_v36 }
 0x683   :  { %1844 = vmatmul.mubr.msk.f32.vlgmr.msra.gmra.mxu0 %vm85_vm0, %v865_v37 }
 0x684   :  { %1858 = vmatpush3.msra.mxu0 %v1068_v46 }
 0x743   :  { %v1845_v41 = vpop.f32.mrf.mxu0 }
 0x744   :  { %v955_v45 = vadd.f32 %v1845_v41, %v1697_v42 }
 0x745   :  { %v949_v43 = vpop.f32.mrf.mxu0 }
 0x746   :  { %v950_v44 = vadd.f32 %v1697_v42, %v949_v43 }
 0x748   :  { %1854 = vmatprep.mubr.msk.f32.mxu1 %vm85_vm0, %v950_v44 }
 0x749   :  { %1855 = vmatmul.mubr.msk.f32.vlgmr.msra.gmra.mxu1 %vm85_vm0, %v955_v45 }
 0x809   :  { %v1856_v48 = vpop.f32.mrf.mxu1 }
 0x80a   :  { %v1047_v49 = vadd.f32 %v1856_v48, %v1700_v47  ;;  %v1324_v48 = vld [vmem:[%s2380_s10 + $0x30] sm:$0xff] }
 0x80b   :  { %v1041_v50 = vpop.f32.mrf.mxu1 }
 0x80c   :  { %v1051_v51 = vmul.f32 %v1047_v49, %v1047_v49  ;;  %v1042_v52 = vadd.f32 %v1700_v47, %v1041_v50  ;;  %v1325_v47 = vld [vmem:[%s2380_s10 + $0x38] sm:$0xff]  ;;  %v1322_v50 = vld [vmem:[%s2380_s10 + $0x20] sm:$0xff] }
 0x80d   :  { %1873 = vmatprep.subr.mxu0 %v1325_v47 }
 0x80e   :  { %v1053_v53 = vmul.f32 %v1051_v51, %v1047_v49  ;;  %v1050_v54 = vmul.f32 %v1042_v52, %v1042_v52  ;;  %v1321_v51 = vld [vmem:[%s2380_s10 + $0x18] sm:$0xff] }
 0x810   :  { %v1055_v55 = vmul.f32 0.044715, %v1053_v53  ;;  %v1052_v56 = vmul.f32 %v1050_v54, %v1042_v52  ;;  %v1319_v53 = vld [vmem:[%s2380_s10 + $0x8] sm:$0xff]  ;;  %v1318_v54 = vld [vmem:[%s2380_s10] sm:$0xff] }
 0x812   :  { %v1057_v57 = vadd.f32 %v1055_v55, %v1047_v49  ;;  %v1054_v58 = vmul.f32 0.044715, %v1052_v56  ;;  %v1418_v55 = vld [vmem:[%s2388_s18 + $0x18] sm:$0xff]  ;;  %v1708_v56 = vld [vmem:[%s2379_s9] ss:$0 sm:$0xff] }
 0x814   :  { %v1059_v59 = vmul.f32 0.7978846, %v1057_v57  ;;  %v1056_v60 = vadd.f32 %v1054_v58, %v1042_v52 }
 0x816   :  { %1936 = vtanh.f32 %v1059_v59  ;;  %v1058_v61 = vmul.f32 0.7978846, %v1056_v60 }
 0x818   :  { %1938 = vtanh.f32 %v1058_v61 }
 0x823   :  { %v1937_v62 = vpop.eup %1936 }
 0x824   :  { %v1063_v63 = vadd.f32 1.0, %v1937_v62 }
 0x825   :  { %v1939_v0 = vpop.eup %1938 }
 0x826   :  { %v1062_v1 = vadd.f32 1.0, %v1939_v0  ;;  %v1065_v3 = vmul.f32 0.5, %v1063_v63 }
 0x828   :  { %v1064_v4 = vmul.f32 0.5, %v1062_v1  ;;  %v1067_v7 = vmul.f32 %v1065_v3, %v1047_v49  ;;  %v1323_v49 = vld [vmem:[%s2380_s10 + $0x28] sm:$0xff] }
 0x82a   :  { %v1066_v6 = vmul.f32 %v1064_v4, %v1042_v52  ;;  %v1320_v52 = vld [vmem:[%s2380_s10 + $0x10] sm:$0xff] }
 0x82c   :  { %1859 = vmatprep.mubr.msk.f32.mxu0 %vm349_vm8, %v1066_v6 }
 0x82d   :  { %1860 = vmatmul.mubr.msk.f32.vlgmr.msra.gmra.mxu0 %vm349_vm8, %v1067_v7 }
 0x82e   :  { %1874 = vmatpush3.msra.mxu0 %v1325_v47 }
 0x82f   :  { %1875 = vmatprep.subr.mxu0 %v1324_v48 }
 0x830   :  { %1876 = vmatpush3.msra.mxu0 %v1324_v48 }
 0x831   :  { %1877 = vmatprep.subr.mxu0 %v1323_v49 }
 0x832   :  { %1878 = vmatpush3.msra.mxu0 %v1323_v49 }
 0x833   :  { %1879 = vmatprep.subr.mxu0 %v1322_v50 }
 0x834   :  { %1880 = vmatpush3.msra.mxu0 %v1322_v50  ;;  %v1719_v50 = vld [vmem:[%s2391_s21] ss:$0 sm:$0xff] }
 0x835   :  { %1881 = vmatprep.subr.mxu0 %v1321_v51 }
 0x836   :  { %1882 = vmatpush3.msra.mxu0 %v1321_v51 }
 0x837   :  { %1883 = vmatprep.subr.mxu0 %v1320_v52 }
 0x838   :  { %1884 = vmatpush3.msra.mxu0 %v1320_v52 }
 0x839   :  { %1885 = vmatprep.subr.mxu0 %v1319_v53 }
 0x83a   :  { %1886 = vmatpush3.msra.mxu0 %v1319_v53 }
 0x83b   :  { %1887 = vmatprep.subr.mxu0 %v1318_v54 }
 0x83c   :  { %1888 = vmatpush3.msra.mxu0 %v1318_v54 }
 0x8ed   :  { %v1861_v8 = vpop.f32.mrf.mxu0 }
 0x8ee   :  { %v1151_v12 = vadd.f32 %v1861_v8, %v955_v45 }
 0x8ef   :  { %v1141_v13 = vpop.f32.mrf.mxu0 }
 0x8f0   :  { %v1160_v14 = vadd.f32 %v1705_v9, %v1151_v12  ;;  %v1150_v15 = vadd.f32 %v1141_v13, %v950_v44 }
 0x8f2   :  { %v1159_v16 = vadd.f32 %v1705_v9, %v1150_v15  ;;  %v1162_v17 = vadd.f32 %v1160_v14, %v2127_v5 }
 0x8f4   :  { %v1168_v18 = vsel %vm85_vm0, %v1162_v17, 0.0  ;;  %v1161_v19 = vadd.f32 %v1159_v16, %v2114_v2  ;;  %v1211_v2 = vld [vmem:[%s2378_s8 + $0x18] sm:$0xff] }
 0x8f5   :  { %1169 = vadd.xlane.f32.xlu1 %v1168_v18  ;;  %1862 = vmatprep.subr.mxu1 %v1211_v2 }
 0x8f6   :  { %v1165_v11 = vsel %vm85_vm0, %v1161_v19, 0.0  ;;  %1863 = vmatpush3.msra.mxu1 %v1211_v2 }
 0x8f7   :  { %1166 = vadd.xlane.f32.xlu0 %v1165_v11  ;;  %1864 = vmatprep.subr.mxu1 %v1210_v28  ;;  %v1416_v11 = vld [vmem:[%s2388_s18 + $0x8] sm:$0xff] }
 0x8f8   :  { %1865 = vmatpush3.msra.mxu1 %v1210_v28 }
 0x8f9   :  { %1866 = vmatprep.subr.mxu1 %v1209_v29 }
 0x8fa   :  { %1867 = vmatpush3.msra.mxu1 %v1209_v29 }
 0x8fb   :  { %1868 = vmatprep.subr.mxu1 %v1208_v30 }
 0x8fc   :  { %1869 = vmatpush3.msra.mxu1 %v1208_v30 }
 0x8fd   :  { %1892 = vmatprep.subr.mxu1 %v1418_v55 }
 0x97e   :  { %v1170_v20 = vpop.xlane.xlu1 %1169 }
 0x97f   :  { %v1173_v21 = vmul.f32 0.03125, %v1170_v20  ;;  %v1415_v20 = vld [vmem:[%s2388_s18] sm:$0xff] }
 0x980   :  { %v1167_v22 = vpop.xlane.xlu0 %1166 }
 0x981   :  { %v1172_v23 = vmul.f32 0.03125, %v1167_v22  ;;  %v1175_v24 = vsub.f32 %v1162_v17, %v1173_v21  ;;  %v1711_v22 = vld [vmem:[%s2381_s11] ss:$0 sm:$0xff] }
 0x983   :  { %v1174_v25 = vsub.f32 %v1161_v19, %v1172_v23  ;;  %v1177_v27 = vmul.f32 %v1175_v24, %v1175_v24  ;;  %v1417_v19 = vld [vmem:[%s2388_s18 + $0x10] sm:$0xff] }
 0x985   :  { %v1176_v26 = vmul.f32 %v1174_v25, %v1174_v25  ;;  %v1181_v5 = vsel %vm85_vm0, %v1177_v27, 0.0 }
 0x987   :  { %v1178_v10 = vsel %vm85_vm0, %v1176_v26, 0.0  ;;  %v1525_v26 = vld [vmem:[%s2390_s20] sm:$0xff] }
 0x988   :  { %1179 = vadd.xlane.f32.xlu0 %v1178_v10  ;;  %v1714_v10 = vld [vmem:[%s2389_s19] ss:$0 sm:$0xff] }
 0x98c   :  { %1182 = vadd.xlane.f32.xlu0 %v1181_v5 }
 0xa11   :  { %v1180_v31 = vpop.xlane.xlu0 %1179 }
 0xa12   :  { %v1184_v32 = vmul.f32 0.03125, %v1180_v31 }
 0xa14   :  { %v1186_v33 = vadd.f32 1e-06, %v1184_v32 }
 0xa15   :  { %v1183_v34 = vpop.xlane.xlu0 %1182 }
 0xa16   :  { %1940 = vrsqrt.f32 %v1186_v33  ;;  %v1185_v35 = vmul.f32 0.03125, %v1183_v34 }
 0xa18   :  { %v1187_v36 = vadd.f32 1e-06, %v1185_v35 }
 0xa1a   :  { %1942 = vrsqrt.f32 %v1187_v36 }
 0xa23   :  { %v1941_v37 = vpop.eup %1940 }
 0xa24   :  { %v1190_v39 = vmul.f32 %v1941_v37, %v1174_v25 }
 0xa26   :  { %v1198_v41 = vmul.f32 %v1706_v38, %v1190_v39 }
 0xa27   :  { %v1943_v42 = vpop.eup %1942 }
 0xa28   :  { %v1191_v43 = vmul.f32 %v1943_v42, %v1175_v24  ;;  %v2290_v44 = vadd.f32 %v1707_v40, %v1198_v41 }
 0xa2a   :  { %v1199_v45 = vmul.f32 %v1706_v38, %v1191_v43  ;;  %1870 = vmatprep.mubr.msk.f32.mxu1 %vm85_vm0, %v2290_v44 }
 0xa2c   :  { %v2294_v46 = vadd.f32 %v1707_v40, %v1199_v45 }
 0xa2e   :  { %1871 = vmatmul.mubr.msk.f32.vlgmr.msra.gmra.mxu1 %vm85_vm0, %v2294_v46 }
 0xa2f   :  { %1893 = vmatpush3.msra.mxu1 %v1418_v55 }
 0xa30   :  { %1894 = vmatprep.subr.mxu1 %v1417_v19 }
 0xa31   :  { %1895 = vmatpush3.msra.mxu1 %v1417_v19 }
 0xa32   :  { %1896 = vmatprep.subr.mxu1 %v1416_v11 }
 0xa33   :  { %1897 = vmatpush3.msra.mxu1 %v1416_v11 }
 0xa34   :  { %1898 = vmatprep.subr.mxu1 %v1415_v20 }
 0xa35   :  { %1899 = vmatpush3.msra.mxu1 %v1415_v20 }
 0xa36   :  { %1903 = vmatprep.subr.mxu1 %v1525_v26 }
 0xaee   :  { %v1872_v57 = vpop.f32.mrf.mxu1 }
 0xaef   :  { %v1297_v58 = vadd.f32 %v1872_v57, %v1708_v56 }
 0xaf0   :  { %v1291_v59 = vpop.f32.mrf.mxu1 }
 0xaf1   :  { %v1301_v60 = vmul.f32 %v1297_v58, %v1297_v58  ;;  %v1292_v61 = vadd.f32 %v1708_v56, %v1291_v59 }
 0xaf3   :  { %v1303_v62 = vmul.f32 %v1301_v60, %v1297_v58  ;;  %v1300_v63 = vmul.f32 %v1292_v61, %v1292_v61 }
 0xaf5   :  { %v1305_v0 = vmul.f32 0.044715, %v1303_v62  ;;  %v1302_v1 = vmul.f32 %v1300_v63, %v1292_v61 }
 0xaf7   :  { %v1307_v3 = vadd.f32 %v1305_v0, %v1297_v58  ;;  %v1304_v4 = vmul.f32 0.044715, %v1302_v1 }
 0xaf9   :  { %v1309_v6 = vmul.f32 0.7978846, %v1307_v3  ;;  %v1306_v7 = vadd.f32 %v1304_v4, %v1292_v61 }
 0xafb   :  { %1944 = vtanh.f32 %v1309_v6  ;;  %v1308_v8 = vmul.f32 0.7978846, %v1306_v7 }
 0xafd   :  { %1946 = vtanh.f32 %v1308_v8 }
 0xb08   :  { %v1945_v9 = vpop.eup %1944 }
 0xb09   :  { %v1313_v12 = vadd.f32 1.0, %v1945_v9 }
 0xb0a   :  { %v1947_v13 = vpop.eup %1946 }
 0xb0b   :  { %v1312_v14 = vadd.f32 1.0, %v1947_v13  ;;  %v1315_v15 = vmul.f32 0.5, %v1313_v12 }
 0xb0d   :  { %v1314_v16 = vmul.f32 0.5, %v1312_v14  ;;  %v1317_v18 = vmul.f32 %v1315_v15, %v1297_v58  ;;  %v1720_v15 = vld [vmem:[%s2382_s12] ss:$0 sm:$0xff] }
 0xb0f   :  { %v1316_v17 = vmul.f32 %v1314_v16, %v1292_v61 }
 0xb11   :  { %1889 = vmatprep.mubr.msk.f32.mxu0 %vm1333_vm11, %v1316_v17 }
 0xb12   :  { %1890 = vmatmul.mubr.msk.f32.vlgmr.msra.gmra.mxu0 %vm1333_vm11, %v1317_v18  ;;  %v1721_v18 = vld [vmem:[%s2383_s13] ss:$0 sm:$0xff] }
 0xbd2   :  { %v1891_v21 = vpop.f32.mrf.mxu0 }
 0xbd3   :  { %v1412_v25 = vadd.f32 %v1891_v21, %v1711_v22 }
 0xbd4   :  { %v1406_v23 = vpop.f32.mrf.mxu0 }
 0xbd5   :  { %v1407_v24 = vadd.f32 %v1711_v22, %v1406_v23 }
 0xbd7   :  { %1900 = vmatprep.mubr.msk.f32.mxu1 %vm85_vm0, %v1407_v24 }
 0xbd8   :  { %1901 = vmatmul.mubr.msk.f32.vlgmr.msra.gmra.mxu1 %vm85_vm0, %v1412_v25 }
 0xbd9   :  { %1904 = vmatpush3.msra.mxu1 %v1525_v26 }
 0xc98   :  { %v1902_v27 = vpop.f32.mrf.mxu1 }
 0xc99   :  { %v1504_v5 = vadd.f32 %v1902_v27, %v1714_v10 }
 0xc9a   :  { %v1498_v2 = vpop.f32.mrf.mxu1 }
 0xc9b   :  { %v1508_v28 = vmul.f32 %v1504_v5, %v1504_v5  ;;  %v1499_v29 = vadd.f32 %v1714_v10, %v1498_v2 }
 0xc9d   :  { %v1510_v30 = vmul.f32 %v1508_v28, %v1504_v5  ;;  %v1507_v31 = vmul.f32 %v1499_v29, %v1499_v29 }
 0xc9f   :  { %v1512_v32 = vmul.f32 0.044715, %v1510_v30  ;;  %v1509_v33 = vmul.f32 %v1507_v31, %v1499_v29 }
 0xca1   :  { %v1514_v34 = vadd.f32 %v1512_v32, %v1504_v5  ;;  %v1511_v35 = vmul.f32 0.044715, %v1509_v33 }
 0xca3   :  { %v1516_v36 = vmul.f32 0.7978846, %v1514_v34  ;;  %v1513_v37 = vadd.f32 %v1511_v35, %v1499_v29 }
 0xca5   :  { %1948 = vtanh.f32 %v1516_v36  ;;  %v1515_v38 = vmul.f32 0.7978846, %v1513_v37 }
 0xca7   :  { %1950 = vtanh.f32 %v1515_v38 }
 0xcb2   :  { %v1949_v39 = vpop.eup %1948 }
 0xcb3   :  { %v1520_v40 = vadd.f32 1.0, %v1949_v39 }
 0xcb4   :  { %v1951_v41 = vpop.eup %1950 }
 0xcb5   :  { %v1519_v42 = vadd.f32 1.0, %v1951_v41  ;;  %v1522_v43 = vmul.f32 0.5, %v1520_v40 }
 0xcb7   :  { %v1521_v45 = vmul.f32 0.5, %v1519_v42  ;;  %v1524_v48 = vmul.f32 %v1522_v43, %v1504_v5 }
 0xcb9   :  { %v1523_v47 = vmul.f32 %v1521_v45, %v1499_v29 }
 0xcbb   :  { %1905 = vmatprep.mubr.msk.f32.mxu1 %vm349_vm8, %v1523_v47 }
 0xcbc   :  { %1906 = vmatmul.mubr.msk.f32.vlgmr.msra.gmra.mxu1 %vm349_vm8, %v1524_v48 }
 0xd7c   :  { %v1907_v49 = vpop.f32.mrf.mxu1 }
 0xd7d   :  { %v1608_v51 = vadd.f32 %v1907_v49, %v1412_v25 }
 0xd7e   :  { %v1598_v52 = vpop.f32.mrf.mxu1 }
 0xd7f   :  { %v1617_v53 = vadd.f32 %v1719_v50, %v1608_v51  ;;  %v1607_v54 = vadd.f32 %v1598_v52, %v1407_v24 }
 0xd81   :  { %v1616_v55 = vadd.f32 %v1719_v50, %v1607_v54  ;;  %v1619_v56 = vadd.f32 %v1617_v53, %v2294_v46 }
 0xd83   :  { %v1625_v57 = vsel %vm85_vm0, %v1619_v56, 0.0  ;;  %v1618_v58 = vadd.f32 %v1616_v55, %v2290_v44 }
 0xd84   :  { %1626 = vadd.xlane.f32.xlu0 %v1625_v57 }
 0xd85   :  { %v1622_v59 = vsel %vm85_vm0, %v1618_v58, 0.0 }
 0xd86   :  { %1623 = vadd.xlane.f32.xlu1 %v1622_v59 }
 0xe0d   :  { %v1627_v60 = vpop.xlane.xlu0 %1626 }
 0xe0e   :  { %v1629_v61 = vmul.f32 0.03125, %v1627_v60 }
 0xe0f   :  { %v1624_v62 = vpop.xlane.xlu1 %1623 }
 0xe10   :  { %v1631_v63 = vsub.f32 %v1619_v56, %v1629_v61  ;;  %v1628_v0 = vmul.f32 0.03125, %v1624_v62 }
 0xe12   :  { %v1630_v1 = vsub.f32 %v1618_v58, %v1628_v0  ;;  %v1633_v3 = vmul.f32 %v1631_v63, %v1631_v63 }
 0xe14   :  { %v1637_v4 = vsel %vm85_vm0, %v1633_v3, 0.0  ;;  %v1632_v6 = vmul.f32 %v1630_v1, %v1630_v1 }
 0xe15   :  { %1638 = vadd.xlane.f32.xlu0 %v1637_v4 }
 0xe16   :  { %v1634_v46 = vsel %vm85_vm0, %v1632_v6, 0.0 }
 0xe17   :  { %1635 = vadd.xlane.f32.xlu1 %v1634_v46 }
 0xe9e   :  { %v1639_v7 = vpop.xlane.xlu0 %1638 }
 0xe9f   :  { %v1641_v44 = vmul.f32 0.03125, %v1639_v7 }
 0xea0   :  { %v1636_v8 = vpop.xlane.xlu1 %1635 }
 0xea1   :  { %v1643_v9 = vadd.f32 1e-06, %v1641_v44  ;;  %v1640_v12 = vmul.f32 0.03125, %v1636_v8 }
 0xea3   :  { %1952 = vrsqrt.f32 %v1643_v9  ;;  %v1642_v13 = vadd.f32 1e-06, %v1640_v12 }
 0xea5   :  { %1954 = vrsqrt.f32 %v1642_v13 }
 0xeb0   :  { %v1953_v14 = vpop.eup %1952 }
 0xeb1   :  { %v1647_v16 = vmul.f32 %v1953_v14, %v1631_v63 }
 0xeb2   :  { %v1955_v17 = vpop.eup %1954 }
 0xeb3   :  { %v1646_v19 = vmul.f32 %v1955_v17, %v1630_v1  ;;  %v1655_v11 = vmul.f32 %v1720_v15, %v1647_v16 }
 0xeb5   :  { %v1654_v20 = vmul.f32 %v1720_v15, %v1646_v19  ;;  %v1663_v21 = vadd.f32 %v1721_v18, %v1655_v11 }
 0xeb7   :  { %v1662_v22 = vadd.f32 %v1721_v18, %v1654_v20  ;;  %1665 = vst.msk [vmem:[#allocation2 + $0x8] sm:$0xff] %vm85_vm0, %v1663_v21 }
 0xeb9   :  { %1664 = vst.msk [vmem:[#allocation2] sm:$0xff] %vm85_vm0, %v1662_v22 }
 0xeba   :  { %1967 = shalt.err (!%p1964_p4)
}
 0xebb   :  { %s1988_s12 = smov 128   ;;  %s1989_s13 = smov 8  }
 0xebc   :  { %1677 = dma.vmem_to_hbm [thread:$0]  %s1672_s5, 256, %s2392_s22, [#allocation3], %s1988_s12, %s1988_s12, %s1989_s13  }
 0xebd   :  { %1976 = dma.done.wait [#allocation3], 256  }
 0xebe   :  { %1977 = vsyncadd [#allocation3], 4294967040 }
 0xebf   :  { %1681 = vsyncpa [#allocation3], 1 }

</bundles_post_ra>
